<compile_context>
chip_gen: v6e
topology: v6e:2x2x1
jax: 0.10.0
libtpu: 0.0.40
codegen_flags: <defaults>
</compile_context>

<pallas_src>
import functools

import jax
import jax.numpy as jnp
from jax import lax
from jax.experimental import pallas as pl
from jax.experimental.pallas import tpu as pltpu


def _dwconv_gate_kernel(w_smem, xp_ref, o_ref, *, H, W, K, Ch):
    """One (batch, channel-pair) tile.

    w_smem : (2*Ch*K*K,) f32 flat depthwise weights in SMEM; the second half
             already has the gate scale sqrt(C/2) folded in.
    xp_ref : (2, H+K-1, W+K-1) padded input rows for channels c and c + Ch.
    o_ref  : (H, W) gated output for output channel c.
    """
    c = pl.program_id(1)
    base0 = c * (K * K)                # weights of channel c        (x1 half)
    base1 = (Ch + c) * (K * K)         # weights of channel c + Ch   (x2 half)

    def tree_sum(vals):
        # Pairwise (log-depth) reduction -> short dependence chains on the VPU.
        while len(vals) > 1:
            nxt = [vals[i] + vals[i + 1] for i in range(0, len(vals) - 1, 2)]
            if len(vals) % 2:
                nxt.append(vals[-1])
            vals = nxt
        return vals[0]

    def kh_body(kh, carry):
        acc0, acc1 = carry
        row_off = kh * K

        def one_row(h, base):
            prods = []
            for kw in range(K):                       # kw unrolled (13 taps)
                w_s = w_smem[base + row_off + kw]     # scalar SMEM load
                # Read the shifted window straight from the ref; cast per-slice.
                t = xp_ref[h, pl.ds(kh, H), kw:kw + W].astype(jnp.float32)
                prods.append(t * w_s)
            return tree_sum(prods)

        # Both channel halves are independent within an iteration (more ILP);
        # each carry sees only one add per kh iteration (13-long chain total).
        return acc0 + one_row(0, base0), acc1 + one_row(1, base1)

    zero = jnp.zeros((H, W), jnp.float32)
    acc0, acc1 = lax.fori_loop(0, K, kh_body, (zero, zero))

    # Gate: x1 * (x2 / scale); scale^-1 = sqrt(C/2) already folded into acc1.
    o_ref[...] = (acc0 * acc1).astype(o_ref.dtype)


def simple_gate(x, w):
    """x: (B, H, W, C) NHWC, w: (K, K, C) depthwise weights -> (B, H, W, C//2)."""
    B, H, W, C = x.shape
    K = w.shape[0]
    assert C % 2 == 0
    Ch = C // 2
    pad = K // 2
    inv_scale = (C / 2.0) ** 0.5       # 1 / scale, scale = (C/2)^-0.5

    # Channel-outer layout so the gate pair (c, c+Ch) sits in one block and the
    # lane axis is spatial W.
    x_co = jnp.transpose(x, (0, 3, 1, 2)).reshape(B, 2, Ch, H, W)
    xp = jnp.pad(x_co, ((0, 0), (0, 0), (0, 0), (pad, pad), (pad, pad)))
    Hp, Wp = H + K - 1, W + K - 1

    # Fold the gate scale into the x2-half weights (conv is linear), flatten
    # for cheap scalar-indexed SMEM access inside the kernel.
    w_co = jnp.transpose(w, (2, 0, 1)).reshape(2, Ch, K, K)
    w_co = w_co.at[1].multiply(inv_scale)
    w_flat = w_co.reshape(-1).astype(jnp.float32)

    kernel = functools.partial(_dwconv_gate_kernel, H=H, W=W, K=K, Ch=Ch)

    out_co = pl.pallas_call(
        kernel,
        out_shape=jax.ShapeDtypeStruct((B, Ch, H, W), x.dtype),
        grid_spec=pltpu.PrefetchScalarGridSpec(
            num_scalar_prefetch=0,
            grid=(B, Ch),
            in_specs=[
                pl.BlockSpec(memory_space=pltpu.MemorySpace.SMEM),
                pl.BlockSpec((None, 2, None, Hp, Wp),
                             lambda b, c: (b, 0, c, 0, 0)),
            ],
            out_specs=pl.BlockSpec((None, None, H, W),
                                   lambda b, c: (b, c, 0, 0)),
        ),
        compiler_params=pltpu.CompilerParams(
            dimension_semantics=("parallel", "parallel"),
        ),
    )(w_flat, xp)

    # Back to the module's NHWC output layout.
    return jnp.transpose(out_co, (0, 2, 3, 1))


def _reference(x, w):
    """Plain-JAX reference of the same forward pass (for sanity checking)."""
    B, H, W, C = x.shape
    K = w.shape[0]
    pad = K // 2
    xp = jnp.pad(x, ((0, 0), (pad, pad), (pad, pad), (0, 0)))
    acc = jnp.zeros((B, H, W, C), jnp.float32)
    for kh in range(K):
        for kw in range(K):
            acc = acc + xp[:, kh:kh + H, kw:kw + W, :] * w[kh, kw, :]
    half = C // 2
    scale = (C / 2) ** (-0.5)
    return acc[..., :half] * (acc[..., half:] / scale)


if __name__ == "__main__":
    B, H, W, C = 2, 16, 16, 8     # small NHWC input; dim = C = 8 (even)
    K = 13                        # module default kernel_size

    key = jax.random.PRNGKey(0)
    kx, kw = jax.random.split(key)
    x = jax.random.normal(kx, (B, H, W, C), dtype=jnp.float32)
    # Deterministic depthwise weights, shape (K, K, C); init ~ conv default scale.
    w = jax.random.normal(kw, (K, K, C), dtype=jnp.float32) * (1.0 / (K * K) ** 0.5)

    out = jax.block_until_ready(simple_gate(x, w))
    ref = _reference(x, w)

    assert out.shape == (B, H, W, C // 2)
    assert jnp.allclose(out, ref, atol=1e-4, rtol=1e-4)

    print("KERNEL_OK")
</pallas_src>

<mosaic_0001>
module attributes {stable_mosaic.version = 11 : i64} {
  func.func @_dwconv_gate_kernel(%arg0: i32, %arg1: i32, %arg2: memref<1352xf32, #tpu.memory_space<smem>>, %arg3: memref<1x2x1x28x28xf32, #tpu.memory_space<vmem>>, %arg4: memref<1x1x16x16xf32, #tpu.memory_space<vmem>>) attributes {dimension_semantics = [#tpu.dimension_semantics<parallel>, #tpu.dimension_semantics<parallel>], iteration_bounds = array<i64: 2, 4>, scalar_prefetch = 0 : i64, scratch_operands = 0 : i64, tpu.core_type = #tpu.core_type<tc>, window_params = [{transform_indices = @transform_0, window_bounds = array<i64: 1352>}, {transform_indices = @transform_1, window_bounds = array<i64: 1, 2, 1, 28, 28>}, {transform_indices = @transform_2, window_bounds = array<i64: 1, 1, 16, 16>}]} {
    %c169_i32 = arith.constant 169 : i32
    %0 = arith.muli %arg1, %c169_i32 : i32
    %c4_i32 = arith.constant 4 : i32
    %1 = arith.addi %c4_i32, %arg1 : i32
    %c169_i32_0 = arith.constant 169 : i32
    %2 = arith.muli %1, %c169_i32_0 : i32
    %cst = arith.constant 0.000000e+00 : f32
    %3 = vector.broadcast %cst : f32 to vector<16x16xf32>
    %c0_i32 = arith.constant 0 : i32
    %c13_i32 = arith.constant 13 : i32
    %4 = arith.addi %c0_i32, %c13_i32 : i32
    %c1_i32 = arith.constant 1 : i32
    %5:2 = scf.for %arg5 = %c0_i32 to %4 step %c1_i32 iter_args(%arg6 = %3, %arg7 = %3) -> (vector<16x16xf32>, vector<16x16xf32>)  : i32 {
      %c13_i32_5 = arith.constant 13 : i32
      %10 = arith.muli %arg5, %c13_i32_5 : i32
      %11 = arith.addi %0, %10 : i32
      %c0_i32_6 = arith.constant 0 : i32
      %12 = arith.addi %11, %c0_i32_6 : i32
      %13 = arith.index_cast %12 : i32 to index
      %14 = memref.load %arg2[%13] : memref<1352xf32, #tpu.memory_space<smem>>
      %c0_7 = arith.constant 0 : index
      %c0_8 = arith.constant 0 : index
      %c0_9 = arith.constant 0 : index
      %15 = arith.index_cast %arg5 : i32 to index
      %c0_10 = arith.constant 0 : index
      %16 = vector.load %arg3[%c0_7, %c0_8, %c0_9, %15, %c0_10] : memref<1x2x1x28x28xf32, #tpu.memory_space<vmem>>, vector<1x1x1x16x16xf32>
      %17 = vector.shape_cast %16 : vector<1x1x1x16x16xf32> to vector<16x16xf32>
      %18 = vector.broadcast %14 : f32 to vector<16x16xf32>
      %19 = arith.mulf %17, %18 : vector<16x16xf32>
      %20 = arith.addi %0, %10 : i32
      %c1_i32_11 = arith.constant 1 : i32
      %21 = arith.addi %20, %c1_i32_11 : i32
      %22 = arith.index_cast %21 : i32 to index
      %23 = memref.load %arg2[%22] : memref<1352xf32, #tpu.memory_space<smem>>
      %c0_12 = arith.constant 0 : index
      %c0_13 = arith.constant 0 : index
      %c0_14 = arith.constant 0 : index
      %24 = arith.index_cast %arg5 : i32 to index
      %c1 = arith.constant 1 : index
      %25 = vector.load %arg3[%c0_12, %c0_13, %c0_14, %24, %c1] : memref<1x2x1x28x28xf32, #tpu.memory_space<vmem>>, vector<1x1x1x16x16xf32>
      %26 = vector.shape_cast %25 : vector<1x1x1x16x16xf32> to vector<16x16xf32>
      %27 = vector.broadcast %23 : f32 to vector<16x16xf32>
      %28 = arith.mulf %26, %27 : vector<16x16xf32>
      %29 = arith.addi %0, %10 : i32
      %c2_i32 = arith.constant 2 : i32
      %30 = arith.addi %29, %c2_i32 : i32
      %31 = arith.index_cast %30 : i32 to index
      %32 = memref.load %arg2[%31] : memref<1352xf32, #tpu.memory_space<smem>>
      %c0_15 = arith.constant 0 : index
      %c0_16 = arith.constant 0 : index
      %c0_17 = arith.constant 0 : index
      %33 = arith.index_cast %arg5 : i32 to index
      %c2 = arith.constant 2 : index
      %34 = vector.load %arg3[%c0_15, %c0_16, %c0_17, %33, %c2] : memref<1x2x1x28x28xf32, #tpu.memory_space<vmem>>, vector<1x1x1x16x16xf32>
      %35 = vector.shape_cast %34 : vector<1x1x1x16x16xf32> to vector<16x16xf32>
      %36 = vector.broadcast %32 : f32 to vector<16x16xf32>
      %37 = arith.mulf %35, %36 : vector<16x16xf32>
      %38 = arith.addi %0, %10 : i32
      %c3_i32 = arith.constant 3 : i32
      %39 = arith.addi %38, %c3_i32 : i32
      %40 = arith.index_cast %39 : i32 to index
      %41 = memref.load %arg2[%40] : memref<1352xf32, #tpu.memory_space<smem>>
      %c0_18 = arith.constant 0 : index
      %c0_19 = arith.constant 0 : index
      %c0_20 = arith.constant 0 : index
      %42 = arith.index_cast %arg5 : i32 to index
      %c3 = arith.constant 3 : index
      %43 = vector.load %arg3[%c0_18, %c0_19, %c0_20, %42, %c3] : memref<1x2x1x28x28xf32, #tpu.memory_space<vmem>>, vector<1x1x1x16x16xf32>
      %44 = vector.shape_cast %43 : vector<1x1x1x16x16xf32> to vector<16x16xf32>
      %45 = vector.broadcast %41 : f32 to vector<16x16xf32>
      %46 = arith.mulf %44, %45 : vector<16x16xf32>
      %47 = arith.addi %0, %10 : i32
      %c4_i32_21 = arith.constant 4 : i32
      %48 = arith.addi %47, %c4_i32_21 : i32
      %49 = arith.index_cast %48 : i32 to index
      %50 = memref.load %arg2[%49] : memref<1352xf32, #tpu.memory_space<smem>>
      %c0_22 = arith.constant 0 : index
      %c0_23 = arith.constant 0 : index
      %c0_24 = arith.constant 0 : index
      %51 = arith.index_cast %arg5 : i32 to index
      %c4 = arith.constant 4 : index
      %52 = vector.load %arg3[%c0_22, %c0_23, %c0_24, %51, %c4] : memref<1x2x1x28x28xf32, #tpu.memory_space<vmem>>, vector<1x1x1x16x16xf32>
      %53 = vector.shape_cast %52 : vector<1x1x1x16x16xf32> to vector<16x16xf32>
      %54 = vector.broadcast %50 : f32 to vector<16x16xf32>
      %55 = arith.mulf %53, %54 : vector<16x16xf32>
      %56 = arith.addi %0, %10 : i32
      %c5_i32 = arith.constant 5 : i32
      %57 = arith.addi %56, %c5_i32 : i32
      %58 = arith.index_cast %57 : i32 to index
      %59 = memref.load %arg2[%58] : memref<1352xf32, #tpu.memory_space<smem>>
      %c0_25 = arith.constant 0 : index
      %c0_26 = arith.constant 0 : index
      %c0_27 = arith.constant 0 : index
      %60 = arith.index_cast %arg5 : i32 to index
      %c5 = arith.constant 5 : index
      %61 = vector.load %arg3[%c0_25, %c0_26, %c0_27, %60, %c5] : memref<1x2x1x28x28xf32, #tpu.memory_space<vmem>>, vector<1x1x1x16x16xf32>
      %62 = vector.shape_cast %61 : vector<1x1x1x16x16xf32> to vector<16x16xf32>
      %63 = vector.broadcast %59 : f32 to vector<16x16xf32>
      %64 = arith.mulf %62, %63 : vector<16x16xf32>
      %65 = arith.addi %0, %10 : i32
      %c6_i32 = arith.constant 6 : i32
      %66 = arith.addi %65, %c6_i32 : i32
      %67 = arith.index_cast %66 : i32 to index
      %68 = memref.load %arg2[%67] : memref<1352xf32, #tpu.memory_space<smem>>
      %c0_28 = arith.constant 0 : index
      %c0_29 = arith.constant 0 : index
      %c0_30 = arith.constant 0 : index
      %69 = arith.index_cast %arg5 : i32 to index
      %c6 = arith.constant 6 : index
      %70 = vector.load %arg3[%c0_28, %c0_29, %c0_30, %69, %c6] : memref<1x2x1x28x28xf32, #tpu.memory_space<vmem>>, vector<1x1x1x16x16xf32>
      %71 = vector.shape_cast %70 : vector<1x1x1x16x16xf32> to vector<16x16xf32>
      %72 = vector.broadcast %68 : f32 to vector<16x16xf32>
      %73 = arith.mulf %71, %72 : vector<16x16xf32>
      %74 = arith.addi %0, %10 : i32
      %c7_i32 = arith.constant 7 : i32
      %75 = arith.addi %74, %c7_i32 : i32
      %76 = arith.index_cast %75 : i32 to index
      %77 = memref.load %arg2[%76] : memref<1352xf32, #tpu.memory_space<smem>>
      %c0_31 = arith.constant 0 : index
      %c0_32 = arith.constant 0 : index
      %c0_33 = arith.constant 0 : index
      %78 = arith.index_cast %arg5 : i32 to index
      %c7 = arith.constant 7 : index
      %79 = vector.load %arg3[%c0_31, %c0_32, %c0_33, %78, %c7] : memref<1x2x1x28x28xf32, #tpu.memory_space<vmem>>, vector<1x1x1x16x16xf32>
      %80 = vector.shape_cast %79 : vector<1x1x1x16x16xf32> to vector<16x16xf32>
      %81 = vector.broadcast %77 : f32 to vector<16x16xf32>
      %82 = arith.mulf %80, %81 : vector<16x16xf32>
      %83 = arith.addi %0, %10 : i32
      %c8_i32 = arith.constant 8 : i32
      %84 = arith.addi %83, %c8_i32 : i32
      %85 = arith.index_cast %84 : i32 to index
      %86 = memref.load %arg2[%85] : memref<1352xf32, #tpu.memory_space<smem>>
      %c0_34 = arith.constant 0 : index
      %c0_35 = arith.constant 0 : index
      %c0_36 = arith.constant 0 : index
      %87 = arith.index_cast %arg5 : i32 to index
      %c8 = arith.constant 8 : index
      %88 = vector.load %arg3[%c0_34, %c0_35, %c0_36, %87, %c8] : memref<1x2x1x28x28xf32, #tpu.memory_space<vmem>>, vector<1x1x1x16x16xf32>
      %89 = vector.shape_cast %88 : vector<1x1x1x16x16xf32> to vector<16x16xf32>
      %90 = vector.broadcast %86 : f32 to vector<16x16xf32>
      %91 = arith.mulf %89, %90 : vector<16x16xf32>
      %92 = arith.addi %0, %10 : i32
      %c9_i32 = arith.constant 9 : i32
      %93 = arith.addi %92, %c9_i32 : i32
      %94 = arith.index_cast %93 : i32 to index
      %95 = memref.load %arg2[%94] : memref<1352xf32, #tpu.memory_space<smem>>
      %c0_37 = arith.constant 0 : index
      %c0_38 = arith.constant 0 : index
      %c0_39 = arith.constant 0 : index
      %96 = arith.index_cast %arg5 : i32 to index
      %c9 = arith.constant 9 : index
      %97 = vector.load %arg3[%c0_37, %c0_38, %c0_39, %96, %c9] : memref<1x2x1x28x28xf32, #tpu.memory_space<vmem>>, vector<1x1x1x16x16xf32>
      %98 = vector.shape_cast %97 : vector<1x1x1x16x16xf32> to vector<16x16xf32>
      %99 = vector.broadcast %95 : f32 to vector<16x16xf32>
      %100 = arith.mulf %98, %99 : vector<16x16xf32>
      %101 = arith.addi %0, %10 : i32
      %c10_i32 = arith.constant 10 : i32
      %102 = arith.addi %101, %c10_i32 : i32
      %103 = arith.index_cast %102 : i32 to index
      %104 = memref.load %arg2[%103] : memref<1352xf32, #tpu.memory_space<smem>>
      %c0_40 = arith.constant 0 : index
      %c0_41 = arith.constant 0 : index
      %c0_42 = arith.constant 0 : index
      %105 = arith.index_cast %arg5 : i32 to index
      %c10 = arith.constant 10 : index
      %106 = vector.load %arg3[%c0_40, %c0_41, %c0_42, %105, %c10] : memref<1x2x1x28x28xf32, #tpu.memory_space<vmem>>, vector<1x1x1x16x16xf32>
      %107 = vector.shape_cast %106 : vector<1x1x1x16x16xf32> to vector<16x16xf32>
      %108 = vector.broadcast %104 : f32 to vector<16x16xf32>
      %109 = arith.mulf %107, %108 : vector<16x16xf32>
      %110 = arith.addi %0, %10 : i32
      %c11_i32 = arith.constant 11 : i32
      %111 = arith.addi %110, %c11_i32 : i32
      %112 = arith.index_cast %111 : i32 to index
      %113 = memref.load %arg2[%112] : memref<1352xf32, #tpu.memory_space<smem>>
      %c0_43 = arith.constant 0 : index
      %c0_44 = arith.constant 0 : index
      %c0_45 = arith.constant 0 : index
      %114 = arith.index_cast %arg5 : i32 to index
      %c11 = arith.constant 11 : index
      %115 = vector.load %arg3[%c0_43, %c0_44, %c0_45, %114, %c11] : memref<1x2x1x28x28xf32, #tpu.memory_space<vmem>>, vector<1x1x1x16x16xf32>
      %116 = vector.shape_cast %115 : vector<1x1x1x16x16xf32> to vector<16x16xf32>
      %117 = vector.broadcast %113 : f32 to vector<16x16xf32>
      %118 = arith.mulf %116, %117 : vector<16x16xf32>
      %119 = arith.addi %0, %10 : i32
      %c12_i32 = arith.constant 12 : i32
      %120 = arith.addi %119, %c12_i32 : i32
      %121 = arith.index_cast %120 : i32 to index
      %122 = memref.load %arg2[%121] : memref<1352xf32, #tpu.memory_space<smem>>
      %c0_46 = arith.constant 0 : index
      %c0_47 = arith.constant 0 : index
      %c0_48 = arith.constant 0 : index
      %123 = arith.index_cast %arg5 : i32 to index
      %c12 = arith.constant 12 : index
      %124 = vector.load %arg3[%c0_46, %c0_47, %c0_48, %123, %c12] : memref<1x2x1x28x28xf32, #tpu.memory_space<vmem>>, vector<1x1x1x16x16xf32>
      %125 = vector.shape_cast %124 : vector<1x1x1x16x16xf32> to vector<16x16xf32>
      %126 = vector.broadcast %122 : f32 to vector<16x16xf32>
      %127 = arith.mulf %125, %126 : vector<16x16xf32>
      %128 = arith.addf %19, %28 : vector<16x16xf32>
      %129 = arith.addf %37, %46 : vector<16x16xf32>
      %130 = arith.addf %55, %64 : vector<16x16xf32>
      %131 = arith.addf %73, %82 : vector<16x16xf32>
      %132 = arith.addf %91, %100 : vector<16x16xf32>
      %133 = arith.addf %109, %118 : vector<16x16xf32>
      %134 = arith.addf %128, %129 : vector<16x16xf32>
      %135 = arith.addf %130, %131 : vector<16x16xf32>
      %136 = arith.addf %132, %133 : vector<16x16xf32>
      %137 = arith.addf %134, %135 : vector<16x16xf32>
      %138 = arith.addf %136, %127 : vector<16x16xf32>
      %139 = arith.addf %137, %138 : vector<16x16xf32>
      %140 = arith.addf %arg6, %139 : vector<16x16xf32>
      %141 = arith.addi %2, %10 : i32
      %c0_i32_49 = arith.constant 0 : i32
      %142 = arith.addi %141, %c0_i32_49 : i32
      %143 = arith.index_cast %142 : i32 to index
      %144 = memref.load %arg2[%143] : memref<1352xf32, #tpu.memory_space<smem>>
      %c0_50 = arith.constant 0 : index
      %c1_51 = arith.constant 1 : index
      %c0_52 = arith.constant 0 : index
      %145 = arith.index_cast %arg5 : i32 to index
      %c0_53 = arith.constant 0 : index
      %146 = vector.load %arg3[%c0_50, %c1_51, %c0_52, %145, %c0_53] : memref<1x2x1x28x28xf32, #tpu.memory_space<vmem>>, vector<1x1x1x16x16xf32>
      %147 = vector.shape_cast %146 : vector<1x1x1x16x16xf32> to vector<16x16xf32>
      %148 = vector.broadcast %144 : f32 to vector<16x16xf32>
      %149 = arith.mulf %147, %148 : vector<16x16xf32>
      %150 = arith.addi %2, %10 : i32
      %c1_i32_54 = arith.constant 1 : i32
      %151 = arith.addi %150, %c1_i32_54 : i32
      %152 = arith.index_cast %151 : i32 to index
      %153 = memref.load %arg2[%152] : memref<1352xf32, #tpu.memory_space<smem>>
      %c0_55 = arith.constant 0 : index
      %c1_56 = arith.constant 1 : index
      %c0_57 = arith.constant 0 : index
      %154 = arith.index_cast %arg5 : i32 to index
      %c1_58 = arith.constant 1 : index
      %155 = vector.load %arg3[%c0_55, %c1_56, %c0_57, %154, %c1_58] : memref<1x2x1x28x28xf32, #tpu.memory_space<vmem>>, vector<1x1x1x16x16xf32>
      %156 = vector.shape_cast %155 : vector<1x1x1x16x16xf32> to vector<16x16xf32>
      %157 = vector.broadcast %153 : f32 to vector<16x16xf32>
      %158 = arith.mulf %156, %157 : vector<16x16xf32>
      %159 = arith.addi %2, %10 : i32
      %c2_i32_59 = arith.constant 2 : i32
      %160 = arith.addi %159, %c2_i32_59 : i32
      %161 = arith.index_cast %160 : i32 to index
      %162 = memref.load %arg2[%161] : memref<1352xf32, #tpu.memory_space<smem>>
      %c0_60 = arith.constant 0 : index
      %c1_61 = arith.constant 1 : index
      %c0_62 = arith.constant 0 : index
      %163 = arith.index_cast %arg5 : i32 to index
      %c2_63 = arith.constant 2 : index
      %164 = vector.load %arg3[%c0_60, %c1_61, %c0_62, %163, %c2_63] : memref<1x2x1x28x28xf32, #tpu.memory_space<vmem>>, vector<1x1x1x16x16xf32>
      %165 = vector.shape_cast %164 : vector<1x1x1x16x16xf32> to vector<16x16xf32>
      %166 = vector.broadcast %162 : f32 to vector<16x16xf32>
      %167 = arith.mulf %165, %166 : vector<16x16xf32>
      %168 = arith.addi %2, %10 : i32
      %c3_i32_64 = arith.constant 3 : i32
      %169 = arith.addi %168, %c3_i32_64 : i32
      %170 = arith.index_cast %169 : i32 to index
      %171 = memref.load %arg2[%170] : memref<1352xf32, #tpu.memory_space<smem>>
      %c0_65 = arith.constant 0 : index
      %c1_66 = arith.constant 1 : index
      %c0_67 = arith.constant 0 : index
      %172 = arith.index_cast %arg5 : i32 to index
      %c3_68 = arith.constant 3 : index
      %173 = vector.load %arg3[%c0_65, %c1_66, %c0_67, %172, %c3_68] : memref<1x2x1x28x28xf32, #tpu.memory_space<vmem>>, vector<1x1x1x16x16xf32>
      %174 = vector.shape_cast %173 : vector<1x1x1x16x16xf32> to vector<16x16xf32>
      %175 = vector.broadcast %171 : f32 to vector<16x16xf32>
      %176 = arith.mulf %174, %175 : vector<16x16xf32>
      %177 = arith.addi %2, %10 : i32
      %c4_i32_69 = arith.constant 4 : i32
      %178 = arith.addi %177, %c4_i32_69 : i32
      %179 = arith.index_cast %178 : i32 to index
      %180 = memref.load %arg2[%179] : memref<1352xf32, #tpu.memory_space<smem>>
      %c0_70 = arith.constant 0 : index
      %c1_71 = arith.constant 1 : index
      %c0_72 = arith.constant 0 : index
      %181 = arith.index_cast %arg5 : i32 to index
      %c4_73 = arith.constant 4 : index
      %182 = vector.load %arg3[%c0_70, %c1_71, %c0_72, %181, %c4_73] : memref<1x2x1x28x28xf32, #tpu.memory_space<vmem>>, vector<1x1x1x16x16xf32>
      %183 = vector.shape_cast %182 : vector<1x1x1x16x16xf32> to vector<16x16xf32>
      %184 = vector.broadcast %180 : f32 to vector<16x16xf32>
      %185 = arith.mulf %183, %184 : vector<16x16xf32>
      %186 = arith.addi %2, %10 : i32
      %c5_i32_74 = arith.constant 5 : i32
      %187 = arith.addi %186, %c5_i32_74 : i32
      %188 = arith.index_cast %187 : i32 to index
      %189 = memref.load %arg2[%188] : memref<1352xf32, #tpu.memory_space<smem>>
      %c0_75 = arith.constant 0 : index
      %c1_76 = arith.constant 1 : index
      %c0_77 = arith.constant 0 : index
      %190 = arith.index_cast %arg5 : i32 to index
      %c5_78 = arith.constant 5 : index
      %191 = vector.load %arg3[%c0_75, %c1_76, %c0_77, %190, %c5_78] : memref<1x2x1x28x28xf32, #tpu.memory_space<vmem>>, vector<1x1x1x16x16xf32>
      %192 = vector.shape_cast %191 : vector<1x1x1x16x16xf32> to vector<16x16xf32>
      %193 = vector.broadcast %189 : f32 to vector<16x16xf32>
      %194 = arith.mulf %192, %193 : vector<16x16xf32>
      %195 = arith.addi %2, %10 : i32
      %c6_i32_79 = arith.constant 6 : i32
      %196 = arith.addi %195, %c6_i32_79 : i32
      %197 = arith.index_cast %196 : i32 to index
      %198 = memref.load %arg2[%197] : memref<1352xf32, #tpu.memory_space<smem>>
      %c0_80 = arith.constant 0 : index
      %c1_81 = arith.constant 1 : index
      %c0_82 = arith.constant 0 : index
      %199 = arith.index_cast %arg5 : i32 to index
      %c6_83 = arith.constant 6 : index
      %200 = vector.load %arg3[%c0_80, %c1_81, %c0_82, %199, %c6_83] : memref<1x2x1x28x28xf32, #tpu.memory_space<vmem>>, vector<1x1x1x16x16xf32>
      %201 = vector.shape_cast %200 : vector<1x1x1x16x16xf32> to vector<16x16xf32>
      %202 = vector.broadcast %198 : f32 to vector<16x16xf32>
      %203 = arith.mulf %201, %202 : vector<16x16xf32>
      %204 = arith.addi %2, %10 : i32
      %c7_i32_84 = arith.constant 7 : i32
      %205 = arith.addi %204, %c7_i32_84 : i32
      %206 = arith.index_cast %205 : i32 to index
      %207 = memref.load %arg2[%206] : memref<1352xf32, #tpu.memory_space<smem>>
      %c0_85 = arith.constant 0 : index
      %c1_86 = arith.constant 1 : index
      %c0_87 = arith.constant 0 : index
      %208 = arith.index_cast %arg5 : i32 to index
      %c7_88 = arith.constant 7 : index
      %209 = vector.load %arg3[%c0_85, %c1_86, %c0_87, %208, %c7_88] : memref<1x2x1x28x28xf32, #tpu.memory_space<vmem>>, vector<1x1x1x16x16xf32>
      %210 = vector.shape_cast %209 : vector<1x1x1x16x16xf32> to vector<16x16xf32>
      %211 = vector.broadcast %207 : f32 to vector<16x16xf32>
      %212 = arith.mulf %210, %211 : vector<16x16xf32>
      %213 = arith.addi %2, %10 : i32
      %c8_i32_89 = arith.constant 8 : i32
      %214 = arith.addi %213, %c8_i32_89 : i32
      %215 = arith.index_cast %214 : i32 to index
      %216 = memref.load %arg2[%215] : memref<1352xf32, #tpu.memory_space<smem>>
      %c0_90 = arith.constant 0 : index
      %c1_91 = arith.constant 1 : index
      %c0_92 = arith.constant 0 : index
      %217 = arith.index_cast %arg5 : i32 to index
      %c8_93 = arith.constant 8 : index
      %218 = vector.load %arg3[%c0_90, %c1_91, %c0_92, %217, %c8_93] : memref<1x2x1x28x28xf32, #tpu.memory_space<vmem>>, vector<1x1x1x16x16xf32>
      %219 = vector.shape_cast %218 : vector<1x1x1x16x16xf32> to vector<16x16xf32>
      %220 = vector.broadcast %216 : f32 to vector<16x16xf32>
      %221 = arith.mulf %219, %220 : vector<16x16xf32>
      %222 = arith.addi %2, %10 : i32
      %c9_i32_94 = arith.constant 9 : i32
      %223 = arith.addi %222, %c9_i32_94 : i32
      %224 = arith.index_cast %223 : i32 to index
      %225 = memref.load %arg2[%224] : memref<1352xf32, #tpu.memory_space<smem>>
      %c0_95 = arith.constant 0 : index
      %c1_96 = arith.constant 1 : index
      %c0_97 = arith.constant 0 : index
      %226 = arith.index_cast %arg5 : i32 to index
      %c9_98 = arith.constant 9 : index
      %227 = vector.load %arg3[%c0_95, %c1_96, %c0_97, %226, %c9_98] : memref<1x2x1x28x28xf32, #tpu.memory_space<vmem>>, vector<1x1x1x16x16xf32>
      %228 = vector.shape_cast %227 : vector<1x1x1x16x16xf32> to vector<16x16xf32>
      %229 = vector.broadcast %225 : f32 to vector<16x16xf32>
      %230 = arith.mulf %228, %229 : vector<16x16xf32>
      %231 = arith.addi %2, %10 : i32
      %c10_i32_99 = arith.constant 10 : i32
      %232 = arith.addi %231, %c10_i32_99 : i32
      %233 = arith.index_cast %232 : i32 to index
      %234 = memref.load %arg2[%233] : memref<1352xf32, #tpu.memory_space<smem>>
      %c0_100 = arith.constant 0 : index
      %c1_101 = arith.constant 1 : index
      %c0_102 = arith.constant 0 : index
      %235 = arith.index_cast %arg5 : i32 to index
      %c10_103 = arith.constant 10 : index
      %236 = vector.load %arg3[%c0_100, %c1_101, %c0_102, %235, %c10_103] : memref<1x2x1x28x28xf32, #tpu.memory_space<vmem>>, vector<1x1x1x16x16xf32>
      %237 = vector.shape_cast %236 : vector<1x1x1x16x16xf32> to vector<16x16xf32>
      %238 = vector.broadcast %234 : f32 to vector<16x16xf32>
      %239 = arith.mulf %237, %238 : vector<16x16xf32>
      %240 = arith.addi %2, %10 : i32
      %c11_i32_104 = arith.constant 11 : i32
      %241 = arith.addi %240, %c11_i32_104 : i32
      %242 = arith.index_cast %241 : i32 to index
      %243 = memref.load %arg2[%242] : memref<1352xf32, #tpu.memory_space<smem>>
      %c0_105 = arith.constant 0 : index
      %c1_106 = arith.constant 1 : index
      %c0_107 = arith.constant 0 : index
      %244 = arith.index_cast %arg5 : i32 to index
      %c11_108 = arith.constant 11 : index
      %245 = vector.load %arg3[%c0_105, %c1_106, %c0_107, %244, %c11_108] : memref<1x2x1x28x28xf32, #tpu.memory_space<vmem>>, vector<1x1x1x16x16xf32>
      %246 = vector.shape_cast %245 : vector<1x1x1x16x16xf32> to vector<16x16xf32>
      %247 = vector.broadcast %243 : f32 to vector<16x16xf32>
      %248 = arith.mulf %246, %247 : vector<16x16xf32>
      %249 = arith.addi %2, %10 : i32
      %c12_i32_109 = arith.constant 12 : i32
      %250 = arith.addi %249, %c12_i32_109 : i32
      %251 = arith.index_cast %250 : i32 to index
      %252 = memref.load %arg2[%251] : memref<1352xf32, #tpu.memory_space<smem>>
      %c0_110 = arith.constant 0 : index
      %c1_111 = arith.constant 1 : index
      %c0_112 = arith.constant 0 : index
      %253 = arith.index_cast %arg5 : i32 to index
      %c12_113 = arith.constant 12 : index
      %254 = vector.load %arg3[%c0_110, %c1_111, %c0_112, %253, %c12_113] : memref<1x2x1x28x28xf32, #tpu.memory_space<vmem>>, vector<1x1x1x16x16xf32>
      %255 = vector.shape_cast %254 : vector<1x1x1x16x16xf32> to vector<16x16xf32>
      %256 = vector.broadcast %252 : f32 to vector<16x16xf32>
      %257 = arith.mulf %255, %256 : vector<16x16xf32>
      %258 = arith.addf %149, %158 : vector<16x16xf32>
      %259 = arith.addf %167, %176 : vector<16x16xf32>
      %260 = arith.addf %185, %194 : vector<16x16xf32>
      %261 = arith.addf %203, %212 : vector<16x16xf32>
      %262 = arith.addf %221, %230 : vector<16x16xf32>
      %263 = arith.addf %239, %248 : vector<16x16xf32>
      %264 = arith.addf %258, %259 : vector<16x16xf32>
      %265 = arith.addf %260, %261 : vector<16x16xf32>
      %266 = arith.addf %262, %263 : vector<16x16xf32>
      %267 = arith.addf %264, %265 : vector<16x16xf32>
      %268 = arith.addf %266, %257 : vector<16x16xf32>
      %269 = arith.addf %267, %268 : vector<16x16xf32>
      %270 = arith.addf %arg7, %269 : vector<16x16xf32>
      scf.yield %140, %270 : vector<16x16xf32>, vector<16x16xf32>
    }
    %c13_i32_1 = arith.constant 13 : i32
    %6 = arith.mulf %5#0, %5#1 : vector<16x16xf32>
    %c0 = arith.constant 0 : index
    %c0_2 = arith.constant 0 : index
    %c0_3 = arith.constant 0 : index
    %c0_4 = arith.constant 0 : index
    %7 = vector.load %arg4[%c0, %c0_2, %c0_3, %c0_4] : memref<1x1x16x16xf32, #tpu.memory_space<vmem>>, vector<1x1x16x16xf32>
    %8 = vector.shape_cast %7 : vector<1x1x16x16xf32> to vector<16x16xf32>
    %9 = vector.shape_cast %6 : vector<16x16xf32> to vector<1x1x16x16xf32>
    tpu.vector_store %arg4[%c0, %c0_2, %c0_3, %c0_4], %9 {strides = array<i32>} : memref<1x1x16x16xf32, #tpu.memory_space<vmem>>, vector<1x1x16x16xf32>,
    return
  }
  func.func @transform_0(%arg0: i32, %arg1: i32) -> i32 {
    %c0_i32 = arith.constant 0 : i32
    %c0_i32_0 = arith.constant 0 : i32
    return %c0_i32 : i32
  }
  func.func @transform_1(%arg0: i32, %arg1: i32) -> (i32, i32, i32, i32, i32) {
    %c0_i32 = arith.constant 0 : i32
    %c0_i32_0 = arith.constant 0 : i32
    %c0_i32_1 = arith.constant 0 : i32
    %c0_i32_2 = arith.constant 0 : i32
    return %arg0, %c0_i32, %arg1, %c0_i32_0, %c0_i32_1 : i32, i32, i32, i32, i32
  }
  func.func @transform_2(%arg0: i32, %arg1: i32) -> (i32, i32, i32, i32) {
    %c0_i32 = arith.constant 0 : i32
    %c0_i32_0 = arith.constant 0 : i32
    %c0_i32_1 = arith.constant 0 : i32
    return %arg0, %arg1, %c0_i32, %c0_i32_0 : i32, i32, i32, i32
  }
}

</mosaic_0001>

<bundles_post_ra>
// kernel: tpu_custom_call.1
= control target key start
LH: loop header
LB: loop body
LE: loop exit
PB: predicated region body
PF: predicated region fallthrough
CT: control target
= control target key end

     0   :  { %s1473_s0 = inlined_call_operand.vmem [shape: f32[1352], index: 0, kind: input, shape index: {}]   ;;  %s1474_s1 = inlined_call_operand.vmem [shape: f32[2,2,4,28,28], index: 1, kind: input, shape index: {}]   ;;  %s1475_s2 = inlined_call_operand.hbm [shape: f32[2,4,16,16], index: 2, kind: output, shape index: {}]  }
   0x1   :  { %1477 = sst [smem:[#allocation9_spill]] %s1473_s0 }
   0x2   :  { %1478 = sst [smem:[#allocation10_spill]] %s1474_s1 }
   0x3   :  { %7 = vsyncpa [#allocation4], 0 }
   0x4   :  { %8 = vsyncpa [#allocation3], 0 }
   0x5   :  { %10 = vsyncpa [#allocation3 + $0x1], 0  ;;  %s1096_s9 = smov 0   ;;  %s1098_s10 = smov 0  }
   0x6   :  { %s1100_s11 = smov 0   ;;  %s1102_s12 = smov 0  }
   0x7   :  { %s1104_s13 = smov 0   ;;  %s1106_s14 = smov 0  }
   0x8   :  { %s1108_s15 = smov 0   ;;  %s1110_s16 = smov 0  }
   0x9 LB: > { %s771_s17 = sadd.s32 4294967295, %s1051_s16   ;;  %s772_s18 = sadd.s32 4294967294, %s1051_s16   ;;  %s1051_s16 = sphi %s1110_s16, %s16_s16   ;;  %s1047_s15 = sphi %s1108_s15, %s1499_s15   ;;  %s1043_s14 = sphi %s1106_s14, %s1498_s14   ;;  %s1039_s13 = sphi %s1104_s13, %s1497_s13   ;;  %s1035_s12 = sphi %s1102_s12, %s1496_s12   ;;  %s1031_s11 = sphi %s1100_s11, %s1495_s11   ;;  %s1027_s10 = sphi %s1098_s10, %s1494_s10   ;;  %s1023_s9 = sphi %s1096_s9, %s1493_s9  }
   0xa   : > { %s25_s19 = sadd.s32 1, %s1043_s14  ;;  %s28_s20 = sadd.s32 1, %s1047_s15 }
   0xb   : > { %p26_p0 = scmp.ge.s32.totalorder %s25_s19, 4  ;;  %s58_s21 = sadd.s32 1, %s1031_s11 }
   0xc   : > { %p65_p1 = scmp.ne.s32.totalorder %s1031_s11, %s1027_s10  ;;  %p66_p2 = scmp.eq.s32.totalorder %s1051_s16, 0 }
   0xd   : > { %s1501_s19 = smov (%p26_p0, %s25_s19), 0  ;;  %s1503_s20 = smov (!%p26_p0, %s28_s20), %s1047_s15 }
   0xe   : > { %s54_s22 = ssub.s32 %s1043_s14, %s1501_s19  ;;  %p1149_p3 = por %p66_p2, %p65_p1 }
   0xf   : > { %p30_p4 = scmp.ge.s32.totalorder %s1503_s20, 2  ;;  %p97_p5 = scmp.eq.s32.totalorder %s771_s17, 7 }
  0x10   : > { %p102_p6 = scmp.ne.s32.totalorder %s1027_s10, %s1023_s9  ;;  %p103_p7 = scmp.eq.s32.totalorder %s772_s18, 7 }
  0x11   : > { %s1505_s20 = smov (%p30_p4, %s1503_s20), 0  ;;  %p1157_p8 = por %p97_p5, %p65_p1 }
  0x12   : > { %p1161_p9 = por %p103_p7, %p102_p6  ;;  %s53_s26 = ssub.s32 %s1047_s15, %s1505_s20 }
  0x13   : > { %s1480_s24 = scalar_select %p1157_p8, 1, 0 }
  0x14   : > { %s1481_s25 = scalar_select %p1161_p9, 1, 0 }
  0x15   : > { %p773_p10 = scmp.ge.s32.totalorder %s1051_s16, 1  ;;  %s55_s27 = sor.u32 %s54_s22, %s53_s26 }
  0x16   : > { %p110_p11 = scmp.lt.s32.totalorder %s1051_s16, 9  ;;  %p56_p12 = scmp.eq.s32.totalorder %s55_s27, 0 }
  0x17   : > { %p1173_p0 = scmp.eq.s32.totalorder %s771_s17, 0  ;;  %s1484_s0 = sld [smem:[#allocation9_spill]] }
  0x18   : > { %p1169_p13 = pnand %p773_p10, %p110_p11 }
  0x19   : > { %s1178_s30 = scalar_select %p56_p12, %s1031_s11, %s58_s21  }
  0x1a   : > { %p798_p1 = pneg %p1169_p13 }
  0x1c   : > { %p799_p2 = pnand %p1173_p0, %p798_p1 }
  0x1d   : > { %s123_s5 = sshll.u32 %s1484_s0, 4  ;;  %s124_s5 = int_to_ptr.vmem [resolvable:$true] %s123_s5 }
  0x1e   : > { %s920_s6 = scalar_lea.vmem %s124_s5, 176  ;;  %p922_p5 = pneg %p799_p2 }
  0x1f   : > { %p921_p4 = scmp.ne.s32.totalorder %s124_s5, %s920_s6  ;;  %s927_s7 = scalar_lea.vmem %s124_s5, 256 }
  0x20   : > { %p928_p10 = scmp.lt.s32.totalorder %s124_s5, %s124_s5  ;;  %p929_p11 = scmp.lt.s32.totalorder %s927_s7, %s920_s6 }
  0x21   : > { %p923_p6 = pnand %p922_p5, %p921_p4 }
  0x22   : > { %p930_p9 = por %p929_p11, %p928_p10 }
  0x23   : > { %p924_p7 = pneg %p923_p6 }
  0x25   : > { %p931_p12 = pnand %p930_p9, %p924_p7 }
  0x27   : > { %934 = shalt.err (!%p931_p12)
}
  0x28   : > { %s1073_s8 = smov [#allocation2]   ;;  %p775_p8 = scmp.ge.s32.totalorder %s1051_s16, 8 }
  0x29   : > { %801 = dma.vmem_to_smem (!%p799_p2), %s124_s5, 176, %s1073_s8, [#allocation4]  }
  0x2a   : > { %130 = sbr.rel (%p775_p8) target bundleno = 61 (0x3d), region = 20 }
  0x2f   : > { %133 = sbr.rel (!%p1149_p3) target bundleno = 61 (0x3d), region = 24  ;;  %s135_s17 = sand.u32 (%p1149_p3), 1, %s1031_s11  }
  0x30   : > { %s777_s18 = sshll.u32 (%p1149_p3), %s1043_s14, 2  ;;  %s776_s21 = sshll.u32 (%p1149_p3), %s135_s17, 6 }
  0x31   : > { %s778_s22 = sshll.u32 (%p1149_p3), %s1047_s15, 5  ;;  %s1485_s1 = sld [smem:[#allocation10_spill]] (%p1149_p3) }
  0x32   : > { %s140_s26 = sadd.s32 (%p1149_p3), %s778_s22, %s777_s18  ;;  %s137_s5 = scalar_lea.vmem (%p1149_p3), [#allocation5], %s776_s21 }
  0x33   : > { %s779_s27 = sshll.u32 (%p1149_p3), %s140_s26, 3 }
  0x37   : > { %s142_s6 = scalar_lea.vmem %s1485_s1, %s779_s27 }
  0x38   : > { %v185_v0 = vld [vmem:[%s142_s6] sm:$0xff]  ;;  %v187_v1 = vld [vmem:[%s142_s6 + $0x8] sm:$0xff]  ;;  %v189_v2 = vld [vmem:[%s142_s6 + $0x10] sm:$0xff] }
  0x39   : > { %186 = vst [vmem:[%s137_s5] sm:$0xff] %v185_v0  ;;  %188 = vst [vmem:[%s137_s5 + $0x8] sm:$0xff] %v187_v1  ;;  %v191_v3 = vld [vmem:[%s142_s6 + $0x18] sm:$0xff]  ;;  %v193_v4 = vld [vmem:[%s142_s6 + $0x80] sm:$0xff] }
  0x3a   : > { %190 = vst [vmem:[%s137_s5 + $0x10] sm:$0xff] %v189_v2  ;;  %v195_v5 = vld [vmem:[%s142_s6 + $0x88] sm:$0xff]  ;;  %192 = vst [vmem:[%s137_s5 + $0x18] sm:$0xff] %v191_v3  ;;  %v197_v6 = vld [vmem:[%s142_s6 + $0x90] sm:$0xff] }
  0x3b   : > { %194 = vst [vmem:[%s137_s5 + $0x20] sm:$0xff] %v193_v4  ;;  %196 = vst [vmem:[%s137_s5 + $0x28] sm:$0xff] %v195_v5  ;;  %v199_v7 = vld [vmem:[%s142_s6 + $0x98] sm:$0xff] }
  0x3c   : > { %198 = vst [vmem:[%s137_s5 + $0x30] sm:$0xff] %v197_v6  ;;  %200 = vst [vmem:[%s137_s5 + $0x38] sm:$0xff] %v199_v7 }
  0x3d PF: > { %209 = sbr.rel (%p1169_p13) target bundleno = 483 (0x1e3), region = 62 }
  0x42   : > { %1014 = dma.done.wait (%p1173_p0), [#allocation4], 176  }
  0x43   : > { %1016 = vsyncadd (%p1173_p0), [#allocation4], 4294967120  ;;  %s1203_s23 = sand.u32 1, %s1027_s10  }
  0x44   : > { %s782_s7 = sshll.u32 %s1203_s23, 6 }
  0x45   : > { %s1206_s8 = scalar_lea.vmem [#allocation5], %s782_s7 }
  0x46   : > { %222 = sfence }
  0x47   : > { %s783_s17 = sshll.u32 %s1203_s23, 4  ;;  %s239_s18 = sadd.s32 4, %s1035_s12  ;;  %v1215_v8 = vmov 0.0   ;;  %v1217_v9 = vmov 0.0   ;;  %v1219_v10 = vmov 0.0   ;;  %v1221_v11 = vmov 0.0  }
  0x48   : > { %s1211_s21 = smul.u32 169, %s239_s18  ;;  %s1213_s22 = scalar_lea.vmem [#allocation6], %s783_s17 }
  0x49   : > { %s1223_s29 = smov 0  }
  0x4a LB: >> { %s251_s26 = smul.u32 13, %s1071_s29  ;;  %s254_s17 = scalar_lea.vmem %s1206_s8, %s1071_s29 [#allocation5]  ;;  %s1071_s29 = sphi %s1223_s29, %s246_s29   ;;  %v1067_v11 = vphi %v1221_v11, %v1490_v11   ;;  %v1063_v10 = vphi %v1219_v10, %v1489_v10   ;;  %v1059_v9 = vphi %v1217_v9, %v1488_v9   ;;  %v1055_v8 = vphi %v1215_v8, %v1487_v8  }
  0x4b   : >> { %s1486_s28 = smul.u32 169, %s1035_s12  ;;  %v1254_v12 = vld [vmem:[%s254_s17] sm:$0xff]  ;;  %v1256_v13 = vld [vmem:[%s254_s17 + $0x8] sm:$0xff]  ;;  %s246_s29 = sadd.s32 1, %s1071_s29  }
  0x4c   : >> { %s1246_s3 = sadd.s32 %s251_s26, %s1211_s21  ;;  %v1265_v20 = vld [vmem:[%s254_s17 + $0x20] sm:$0xff]  ;;  %v1267_v22 = vld [vmem:[%s254_s17 + $0x28] sm:$0xff]  ;;  %p243_p3 = scmp.ge.s32.totalorder %s246_s29, 13  }
  0x4d   : >> { %s1243_s27 = sadd.s32 %s251_s26, %s1486_s28  ;;  %s481_s7 = sadd.s32 7, %s1246_s3  ;;  %vm635_vm0 = vcmask (%p243_p3), 130048  }
  0x4e   : >> { %s290_s4 = sadd.s32 7, %s1243_s27  ;;  %s310_s6 = sadd.s32 11, %s1243_s27 }
  0x4f   : >> { %s291_s5 = sld [smem:[#allocation2 + %s290_s4]]  ;;  %s501_s1 = sadd.s32 11, %s1246_s3 }
  0x50   : >> { %s311_s18 = sld [smem:[#allocation2 + %s310_s6]]  ;;  %s270_s26 = sadd.s32 3, %s1243_s27 }
  0x51   : >> { %s482_s0 = sld [smem:[#allocation2 + %s481_s7]]  ;;  %s1074_s4 = smov 127  }
  0x52   : >> { %s502_s28 = sld [smem:[#allocation2 + %s501_s1]]  ;;  %s280_s6 = sadd.s32 5, %s1243_s27 }
  0x53   : >> { %s271_s1 = sld [smem:[#allocation2 + %s270_s26]]  ;;  %s300_s7 = sadd.s32 9, %s1243_s27 }
  0x54   : >> { %s461_s17 = sadd.s32 3, %s1246_s3  ;;  %p1491_p9 = scmp.ne.s32.totalorder (%p243_p3), %s1480_s24, 0 }
  0x55   : >> { %v292_v14 = vstv %s291_s5  ;;  %s281_s5 = sld [smem:[#allocation2 + %s280_s6]] }
  0x56   : >> { %v293_v15 = vmul.f32 %v292_v14, %v1254_v12  ;;  %v312_v16 = vstv %s311_s18  ;;  %v294_v18 = vmul.f32 %v292_v14, %v1256_v13  ;;  %s471_s18 = sadd.s32 5, %s1246_s3 }
  0x57   : >> { %v313_v17 = vmul.f32 %v312_v16, %v1254_v12  ;;  %v314_v19 = vmul.f32 %v312_v16, %v1256_v13  ;;  %v483_v21 = vstv %s482_s0  ;;  %s301_s0 = sld [smem:[#allocation2 + %s300_s7]] }
  0x58   : >> { %352 = vrot.lane.b32.xlu0 %v293_v15, %s1074_s4  ;;  %v484_v23 = vmul.f32 %v1265_v20, %v483_v21  ;;  %v485_v24 = vmul.f32 %v1267_v22, %v483_v21  ;;  %v503_v25 = vstv %s502_s28  ;;  %s462_s28 = sld [smem:[#allocation2 + %s461_s17]]  ;;  %s285_s17 = sadd.s32 6, %s1243_s27 }
  0x59   : >> { %372 = vrot.lane.b32.xlu1 %v313_v17, %s1074_s4  ;;  %v504_v26 = vmul.f32 %v1265_v20, %v503_v25  ;;  %v505_v27 = vmul.f32 %v1267_v22, %v503_v25  ;;  %v272_v28 = vstv %s271_s1  ;;  %s472_s26 = sld [smem:[#allocation2 + %s471_s18]]  ;;  %s491_s1 = sadd.s32 9, %s1246_s3 }
  0x5a   : >> { %v273_v29 = vmul.f32 %v272_v28, %v1254_v12  ;;  %v274_v30 = vmul.f32 %v272_v28, %v1256_v13  ;;  %s492_s6 = sld [smem:[#allocation2 + %s491_s1]]  ;;  %s476_s1 = sadd.s32 6, %s1246_s3 }
  0x5b   : >> { %v282_v31 = vstv %s281_s5  ;;  %s315_s5 = sadd.s32 12, %s1243_s27  ;;  %s286_s18 = sld [smem:[#allocation2 + %s285_s17]] }
  0x5c   : >> { %354 = vrot.lane.b32.xlu0 %v294_v18, %s1074_s4  ;;  %v283_v32 = vmul.f32 %v282_v31, %v1254_v12  ;;  %v284_v33 = vmul.f32 %v282_v31, %v1256_v13  ;;  %s316_s7 = sld [smem:[#allocation2 + %s315_s5]]  ;;  %s496_s5 = sadd.s32 10, %s1246_s3 }
  0x5d   : >> { %374 = vrot.lane.b32.xlu1 %v314_v19, %s1074_s4  ;;  %v302_v34 = vstv %s301_s0  ;;  %s1075_s0 = smov 124   ;;  %s506_s17 = sadd.s32 12, %s1246_s3 }
  0x5e   : >> { %v303_v35 = vmul.f32 %v302_v34, %v1254_v12  ;;  %v304_v36 = vmul.f32 %v302_v34, %v1256_v13  ;;  %v463_v37 = vstv %s462_s28  ;;  %s305_s28 = sadd.s32 10, %s1243_s27 }
  0x5f   : >> { %v464_v38 = vmul.f32 %v1265_v20, %v463_v37  ;;  %v465_v39 = vmul.f32 %v1267_v22, %v463_v37  ;;  %v473_v40 = vstv %s472_s26  ;;  %s306_s26 = sld [smem:[#allocation2 + %s305_s28]]  ;;  %s1076_s28 = smov 126  }
  0x60   : >> { %543 = vrot.lane.b32.xlu0 %v484_v23, %s1074_s4  ;;  %v474_v41 = vmul.f32 %v1265_v20, %v473_v40  ;;  %v475_v42 = vmul.f32 %v1267_v22, %v473_v40  ;;  %v493_v43 = vstv %s492_s6  ;;  %s477_s6 = sld [smem:[#allocation2 + %s476_s1]] }
  0x61   : >> { %545 = vrot.lane.b32.xlu1 %v485_v24, %s1074_s4  ;;  %v494_v44 = vmul.f32 %v1265_v20, %v493_v43  ;;  %v495_v45 = vmul.f32 %v1267_v22, %v493_v43  ;;  %v287_v49 = vstv %s286_s18  ;;  %s1325_s18 = sld [smem:[#allocation2 + %s506_s17]] }
  0x62   : >> { %v317_v46 = vstv %s316_s7  ;;  %v288_v51 = vmul.f32 %v287_v49, %v1254_v12  ;;  %s1318_s7 = sld [smem:[#allocation2 + %s496_s5]]  ;;  %v289_v56 = vmul.f32 %v287_v49, %v1256_v13  ;;  %s451_s5 = sadd.s32 1, %s1246_s3 }
  0x63   : >> { %v318_v47 = vmul.f32 %v317_v46, %v1254_v12  ;;  %v319_v48 = vmul.f32 %v317_v46, %v1256_v13  ;;  %s1344_s17 = sld [smem:[#allocation2 + %s451_s5]]  ;;  %s466_s5 = sadd.s32 4, %s1246_s3 }
  0x64   : >> { %563 = vrot.lane.b32.xlu0 %v504_v26, %s1074_s4 }
  0x65   : >> { %565 = vrot.lane.b32.xlu1 %v505_v27, %s1074_s4  ;;  %v307_v50 = vstv %s306_s26  ;;  %s260_s26 = sadd.s32 1, %s1243_s27 }
  0x66   : >> { %v308_v52 = vmul.f32 %v307_v50, %v1254_v12  ;;  %v478_v57 = vstv %s477_s6  ;;  %v309_v59 = vmul.f32 %v307_v50, %v1256_v13  ;;  %s1333_s1 = sld [smem:[#allocation2 + %s260_s26]]  ;;  %s265_s6 = sadd.s32 2, %s1243_s27 }
  0x67   : >> { %v479_v63 = vmul.f32 %v1265_v20, %v478_v57  ;;  %v480_v2 = vmul.f32 %v1267_v22, %v478_v57  ;;  %v508_v16 = vstv %s1325_s18  ;;  %s456_s26 = sadd.s32 2, %s1246_s3  ;;  %s275_s18 = sadd.s32 4, %s1243_s27 }
  0x68   : >> { %332 = vrot.lane.b32.xlu0 %v273_v29, %s1074_s4  ;;  %v498_v0 = vstv %s1318_s7  ;;  %s1341_s7 = sld [smem:[#allocation2 + %s265_s6]]  ;;  %v509_v21 = vmul.f32 %v1265_v20, %v508_v16  ;;  %v510_v26 = vmul.f32 %v1267_v22, %v508_v16 }
  0x69   : >> { %334 = vrot.lane.b32.xlu1 %v274_v30, %s1074_s4  ;;  %v499_v6 = vmul.f32 %v1265_v20, %v498_v0  ;;  %v500_v14 = vmul.f32 %v1267_v22, %v498_v0  ;;  %s457_s6 = sld [smem:[#allocation2 + %s456_s26]]  ;;  %v453_v29 = vstv %s1344_s17  ;;  %s486_s26 = sadd.s32 8, %s1246_s3 }
  0x6a   : >> { %v454_v34 = vmul.f32 %v1265_v20, %v453_v29  ;;  %v455_v40 = vmul.f32 %v1267_v22, %v453_v29  ;;  %s467_s17 = sld [smem:[#allocation2 + %s466_s5]] }
  0x6c   : >> { %342 = vrot.lane.b32.xlu0 %v283_v32, %s1074_s4  ;;  %v262_v23 = vstv %s1333_s1  ;;  %s276_s1 = sld [smem:[#allocation2 + %s275_s18]] }
  0x6d   : >> { %344 = vrot.lane.b32.xlu1 %v284_v33, %s1074_s4  ;;  %v263_v27 = vmul.f32 %v262_v23, %v1254_v12  ;;  %v264_v32 = vmul.f32 %v262_v23, %v1256_v13  ;;  %s253_s18 = sld [smem:[#allocation2 + %s1243_s27]] }
  0x6e   : >> { %v267_v28 = vstv %s1341_s7 }
  0x6f   : >> { %v268_v33 = vmul.f32 %v267_v28, %v1254_v12  ;;  %v269_v37 = vmul.f32 %v267_v28, %v1256_v13 }
  0x70   : >> { %362 = vrot.lane.b32.xlu0 %v303_v35, %s1074_s4 }
  0x71   : >> { %364 = vrot.lane.b32.xlu1 %v304_v36, %s1074_s4  ;;  %v458_v36 = vstv %s457_s6  ;;  %s487_s6 = sld [smem:[#allocation2 + %s486_s26]] }
  0x74   : >> { %523 = vrot.lane.b32.xlu0 %v464_v38, %s1074_s4 }
  0x75   : >> { %525 = vrot.lane.b32.xlu1 %v465_v39, %s1074_s4 }
  0x78   : >> { %533 = vrot.lane.b32.xlu0 %v474_v41, %s1074_s4  ;;  %v459_v41 = vmul.f32 %v1265_v20, %v458_v36 }
  0x79   : >> { %535 = vrot.lane.b32.xlu1 %v475_v42, %s1074_s4 }
  0x7c   : >> { %553 = vrot.lane.b32.xlu0 %v494_v44, %s1074_s4 }
  0x7d   : >> { %555 = vrot.lane.b32.xlu1 %v495_v45, %s1074_s4  ;;  %v460_v45 = vmul.f32 %v1267_v22, %v458_v36 }
  0x80   : >> { %422 = vrot.lane.b32.xlu0 %v318_v47, %s1075_s0 }
  0x81   : >> { %424 = vrot.lane.b32.xlu1 %v319_v48, %s1075_s0 }
  0xca   : >> { %v353_v53 = vpop.permute.xlu0 %352 }
  0xcb   : >> { %v358_v54 = vadd.f32 %v353_v53, %v288_v51  ;;  %v373_v55 = vpop.permute.xlu1 %372  ;;  %v277_v51 = vstv %s276_s1  ;;  %s654_s1 = sshll.u32 (%p243_p3), %s1213_s22, 4  ;;  %s1415_s1 = int_to_ptr.vmem [resolvable:$true] %s654_s1 }
  0xcc   : >> { %v378_v58 = vadd.f32 %v373_v55, %v308_v52  ;;  %v279_v57 = vmul.f32 %v277_v51, %v1256_v13 }
  0xcd   : >> { %392 = vrot.lane.b32.xlu0 %v358_v54, %s1076_s28  ;;  %v278_v54 = vmul.f32 %v277_v51, %v1254_v12 }
  0xce   : >> { %v355_v60 = vpop.permute.xlu0 %354 }
  0xcf   : >> { %v359_v61 = vadd.f32 %v355_v60, %v289_v56  ;;  %v375_v62 = vpop.permute.xlu1 %374 }
  0xd0   : >> { %v379_v1 = vadd.f32 %v375_v62, %v309_v59  ;;  %v468_v59 = vstv %s467_s17  ;;  %s935_s17 = scalar_lea.vmem (%p243_p3), %s1415_s1, 256 }
  0xd1   : >> { %394 = vrot.lane.b32.xlu1 %v359_v61, %s1076_s28  ;;  %402 = vrot.lane.b32.xlu0 %v378_v58, %s1076_s28  ;;  %v469_v0 = vmul.f32 %v1265_v20, %v468_v59  ;;  %p936_p8 = scmp.ne.s32.totalorder (%p243_p3), %s1415_s1, %s935_s17 }
  0xd2   : >> { %v544_v3 = vpop.permute.xlu0 %543 }
  0xd3   : >> { %v549_v4 = vadd.f32 %v544_v3, %v479_v63  ;;  %v546_v5 = vpop.permute.xlu1 %545  ;;  %p937_p13 = pnand (%p243_p3), %p936_p8, %p1491_p9 }
  0xd4   : >> { %v550_v7 = vadd.f32 %v546_v5, %v480_v2 }
  0xd5   : >> { %404 = vrot.lane.b32.xlu1 %v379_v1, %s1076_s28  ;;  %583 = vrot.lane.b32.xlu0 %v549_v4, %s1076_s28  ;;  %v488_v4 = vstv %s487_s6  ;;  %p938_p0 = pneg (%p243_p3), %p937_p13 }
  0xd6   : >> { %v564_v15 = vpop.permute.xlu0 %563 }
  0xd7   : >> { %v569_v17 = vadd.f32 %v564_v15, %v499_v6  ;;  %v566_v18 = vpop.permute.xlu1 %565 }
  0xd8   : >> { %v570_v19 = vadd.f32 %v566_v18, %v500_v14  ;;  %v470_v14 = vmul.f32 %v1267_v22, %v468_v59 }
  0xd9   : >> { %585 = vrot.lane.b32.xlu1 %v550_v7, %s1076_s28  ;;  %593 = vrot.lane.b32.xlu0 %v569_v17, %s1076_s28  ;;  %v489_v17 = vmul.f32 %v1265_v20, %v488_v4 }
  0xda   : >> { %v333_v24 = vpop.permute.xlu0 %332 }
  0xdb   : >> { %v335_v25 = vpop.permute.xlu1 %334  ;;  %v338_v39 = vadd.f32 %v333_v24, %v268_v33  ;;  %v490_v24 = vmul.f32 %v1267_v22, %v488_v4 }
  0xdc   : >> { %v339_v43 = vadd.f32 %v335_v25, %v269_v37 }
  0xdd   : >> { %595 = vrot.lane.b32.xlu1 %v570_v19, %s1076_s28  ;;  %613 = vrot.lane.b32.xlu0 %v509_v21, %s1075_s0 }
  0xde   : >> { %v343_v30 = vpop.permute.xlu0 %342 }
  0xdf   : >> { %v345_v31 = vpop.permute.xlu1 %344  ;;  %v348_v56 = vadd.f32 %v343_v30, %v278_v54 }
  0xe0   : >> { %v349_v62 = vadd.f32 %v345_v31, %v279_v57 }
  0xe1   : >> { %615 = vrot.lane.b32.xlu1 %v510_v26, %s1075_s0  ;;  %322 = vrot.lane.b32.xlu0 %v263_v27, %s1074_s4 }
  0xe2   : >> { %v363_v35 = vpop.permute.xlu0 %362 }
  0xe3   : >> { %v365_v38 = vpop.permute.xlu1 %364 }
  0xe5   : >> { %324 = vrot.lane.b32.xlu1 %v264_v32, %s1074_s4  ;;  %513 = vrot.lane.b32.xlu0 %v454_v34, %s1074_s4 }
  0xe6   : >> { %v524_v42 = vpop.permute.xlu0 %523 }
  0xe7   : >> { %v529_v44 = vadd.f32 %v524_v42, %v459_v41  ;;  %v526_v46 = vpop.permute.xlu1 %525 }
  0xe8   : >> { %v530_v47 = vadd.f32 %v526_v46, %v460_v45  ;;  %v257_v45 = vstv %s253_s18 }
  0xe9   : >> { %515 = vrot.lane.b32.xlu1 %v455_v40, %s1074_s4  ;;  %382 = vrot.lane.b32.xlu0 %v338_v39, %s1076_s28  ;;  %s295_s4 = sadd.s32 8, %s1243_s27  ;;  %s787_s27 = sshll.u32 (%p243_p3), %s1035_s12, 1 }
  0xea   : >> { %v534_v48 = vpop.permute.xlu0 %533  ;;  %s296_s7 = sld [smem:[#allocation2 + %s295_s4]]  ;;  %s1078_s12 = smov (%p243_p3), [#allocation6]  }
  0xeb   : >> { %v536_v49 = vpop.permute.xlu1 %535  ;;  %v539_v7 = vadd.f32 %v534_v48, %v469_v0  ;;  %v258_v48 = vmul.f32 %v257_v45, %v1254_v12 }
  0xec   : >> { %v540_v23 = vadd.f32 %v536_v49, %v470_v14 }
  0xed   : >> { %384 = vrot.lane.b32.xlu1 %v339_v43, %s1076_s28  ;;  %573 = vrot.lane.b32.xlu0 %v529_v44, %s1076_s28 }
  0xee   : >> { %v554_v50 = vpop.permute.xlu0 %553 }
  0xef   : >> { %v556_v52 = vpop.permute.xlu1 %555  ;;  %v559_v27 = vadd.f32 %v554_v50, %v489_v17 }
  0xf0   : >> { %v297_v58 = vstv %s296_s7  ;;  %v560_v34 = vadd.f32 %v556_v52, %v490_v24  ;;  %v259_v52 = vmul.f32 %v257_v45, %v1256_v13  ;;  %s639_s7 = scalar_lea.sflag (%p243_p3), [#allocation3], %s1203_s23 }
  0xf1   : >> { %575 = vrot.lane.b32.xlu1 %v530_v47, %s1076_s28  ;;  %v298_v63 = vmul.f32 %v297_v58, %v1254_v12  ;;  %v299_v6 = vmul.f32 %v297_v58, %v1256_v13  ;;  %s1077_s28 = smov 120  }
  0xf2   : >> { %v423_v53 = vpop.permute.xlu0 %422 }
  0xf3   : >> { %v425_v55 = vpop.permute.xlu1 %424  ;;  %v368_v5 = vadd.f32 %v363_v35, %v298_v63  ;;  %v369_v21 = vadd.f32 %v365_v38, %v299_v6 }
 0x13f   : >> { %v393_v60 = vpop.permute.xlu0 %392 }
 0x140   : >> { %v398_v61 = vadd.f32 %v393_v60, %v348_v56 }
 0x142   : >> { %412 = vrot.lane.b32.xlu0 %v398_v61, %s1075_s0 }
 0x143   : >> { %v395_v1 = vpop.permute.xlu1 %394  ;;  %v403_v2 = vpop.permute.xlu0 %402 }
 0x144   : >> { %v399_v3 = vadd.f32 %v395_v1, %v349_v62  ;;  %v408_v18 = vadd.f32 %v403_v2, %v368_v5 }
 0x146   : >> { %414 = vrot.lane.b32.xlu1 %v399_v3, %s1075_s0  ;;  %v428_v28 = vadd.f32 %v423_v53, %v408_v18 }
 0x147   : >> { %v405_v15 = vpop.permute.xlu1 %404  ;;  %v584_v16 = vpop.permute.xlu0 %583 }
 0x148   : >> { %v589_v19 = vadd.f32 %v584_v16, %v539_v7  ;;  %v409_v29 = vadd.f32 %v405_v15, %v369_v21 }
 0x14a   : >> { %603 = vrot.lane.b32.xlu0 %v589_v19, %s1075_s0  ;;  %v429_v35 = vadd.f32 %v425_v55, %v409_v29 }
 0x14b   : >> { %v586_v25 = vpop.permute.xlu1 %585  ;;  %v594_v26 = vpop.permute.xlu0 %593 }
 0x14c   : >> { %v590_v30 = vadd.f32 %v586_v25, %v540_v23  ;;  %v599_v31 = vadd.f32 %v594_v26, %v559_v27 }
 0x14e   : >> { %605 = vrot.lane.b32.xlu1 %v590_v30, %s1075_s0  ;;  %432 = vrot.lane.b32.xlu0 %v428_v28, %s1077_s28  ;;  %s443_s0 = sld [smem:[#allocation2 + %s1246_s3]]  ;;  %s788_s3 = sshll.u32 (%p243_p3), %s1039_s13, 3 }
 0x14f   : >> { %v596_v32 = vpop.permute.xlu1 %595  ;;  %v614_v33 = vpop.permute.xlu0 %613  ;;  %s651_s4 = sadd.s32 (%p243_p3), %s788_s3, %s787_s27  ;;  %s939_s13 = sshll.u32 (%p243_p3), %s1078_s12, 4  ;;  %s940_s13 = int_to_ptr.vmem [resolvable:$false] %s939_s13 }
 0x150   : >> { %v619_v36 = vadd.f32 %v614_v33, %v599_v31  ;;  %v600_v37 = vadd.f32 %v596_v32, %v560_v34  ;;  %s789_s8 = sshll.u32 (%p243_p3), %s651_s4, 7  ;;  %p942_p1 = scmp.lt.s32.totalorder (%p243_p3), %s1415_s1, %s940_s13 }
 0x151   : > { %s1420_s5 = scalar_lea.hbm (%p243_p3), %s1475_s2, %s789_s8 }
 0x152   : >> { %434 = vrot.lane.b32.xlu1 %v429_v35, %s1077_s28  ;;  %623 = vrot.lane.b32.xlu0 %v619_v36, %s1077_s28 }
 0x153   : >> { %v616_v38 = vpop.permute.xlu1 %615  ;;  %v323_v40 = vpop.permute.xlu0 %322 }
 0x154   : >> { %v620_v39 = vadd.f32 %v616_v38, %v600_v37  ;;  %v448_v49 = vstv %s443_s0  ;;  %v328_v53 = vadd.f32 %v323_v40, %v258_v48 }
 0x155   : >> { %v449_v54 = vmul.f32 %v1265_v20, %v448_v49  ;;  %v450_v55 = vmul.f32 %v1267_v22, %v448_v49 }
 0x156   : >> { %625 = vrot.lane.b32.xlu1 %v620_v39, %s1077_s28 }
 0x157   : >> { %v325_v41 = vpop.permute.xlu1 %324  ;;  %v514_v42 = vpop.permute.xlu0 %513 }
 0x158   : >> { %v329_v58 = vadd.f32 %v325_v41, %v259_v52  ;;  %v519_v59 = vadd.f32 %v514_v42, %v449_v54 }
 0x15b   : >> { %v516_v43 = vpop.permute.xlu1 %515  ;;  %v383_v44 = vpop.permute.xlu0 %382 }
 0x15c   : >> { %v388_v60 = vadd.f32 %v383_v44, %v328_v53  ;;  %v520_v0 = vadd.f32 %v516_v43, %v450_v55 }
 0x15f   : >> { %v385_v46 = vpop.permute.xlu1 %384  ;;  %v574_v47 = vpop.permute.xlu0 %573 }
 0x160   : >> { %v389_v12 = vadd.f32 %v385_v46, %v329_v58  ;;  %v579_v1 = vadd.f32 %v574_v47, %v519_v59 }
 0x163   : >> { %v576_v50 = vpop.permute.xlu1 %575 }
 0x164   : >> { %v580_v6 = vadd.f32 %v576_v50, %v520_v0 }
 0x1b4   : >> { %v413_v51 = vpop.permute.xlu0 %412 }
 0x1b5   : >> { %v418_v61 = vadd.f32 %v413_v51, %v388_v60 }
 0x1b8   : >> { %v415_v56 = vpop.permute.xlu1 %414 }
 0x1b9   : >> { %v419_v3 = vadd.f32 %v415_v56, %v389_v12 }
 0x1bc   : >> { %v604_v57 = vpop.permute.xlu0 %603 }
 0x1bd   : >> { %v609_v4 = vadd.f32 %v604_v57, %v579_v1 }
 0x1c0   : >> { %v606_v62 = vpop.permute.xlu1 %605  ;;  %v433_v63 = vpop.permute.xlu0 %432 }
 0x1c1   : >> { %v438_v2 = vadd.f32 %v433_v63, %v418_v61  ;;  %v610_v14 = vadd.f32 %v606_v62, %v580_v6 }
 0x1c3   : >> { %v440_v13 = vadd.f32 %v1067_v11, %v438_v2  }
 0x1c4   : >> { %v435_v5 = vpop.permute.xlu1 %434  ;;  %v624_v20 = vpop.permute.xlu0 %623 }
 0x1c5   : >> { %v439_v22 = vadd.f32 %v435_v5, %v419_v3  ;;  %v629_v7 = vadd.f32 %v624_v20, %v609_v4  ;;  %v1490_v11 = vmov %v440_v13 }
 0x1c7   : >> { %v441_v15 = vadd.f32 %v1063_v10, %v439_v22   ;;  %v631_v16 = vadd.f32 %v1059_v9, %v629_v7  }
 0x1c8   : >> { %v626_v17 = vpop.permute.xlu1 %625 }
 0x1c9   : >> { %v630_v18 = vadd.f32 %v626_v17, %v610_v14  ;;  %v1488_v9 = vmov %v631_v16  ;;  %v1489_v10 = vmov %v441_v15  ;;  %245 = sbr.rel (!%p243_p3) target bundleno = 74 (0x4a), region = 120  ;;  %v633_v11 = vmul.f32 (%p243_p3), %v631_v16, %v440_v13 }
 0x1cb   : >> { %v632_v19 = vadd.f32 %v1055_v8, %v630_v18   ;;  %636 = vst.msk [vmem:[%s1213_s22] sm:$0xff] (%p243_p3), %vm635_vm0, %v633_v11 }
 0x1cd   : >> { %v1487_v8 = vmov %v632_v19  ;;  %v634_v21 = vmul.f32 (%p243_p3), %v632_v19, %v441_v15 }
 0x1cf   : > { %637 = vst.msk [vmem:[%s1213_s22 + $0x8] sm:$0xff] %vm635_vm0, %v634_v21  ;;  %s941_s22 = scalar_lea.vmem %s940_s13, 512 }
 0x1d0   : > { %p943_p2 = scmp.lt.s32.totalorder %s941_s22, %s935_s17 }
 0x1d2   : > { %p944_p4 = por %p943_p2, %p942_p1 }
 0x1d4   : > { %p945_p5 = pnand %p944_p4, %p938_p0 }
 0x1d6   : > { %948 = shalt.err (!%p945_p5)
}
 0x1d7   : > { %s949_s26 = scalar_lea.hbm %s1420_s5, 256  ;;  %s953_s18 = scalar_lea.hbm %s1475_s2, 2048 }
 0x1d8   : > { %p950_p6 = scmp.ne.s32.totalorder %s1420_s5, %s949_s26  ;;  %p954_p11 = scmp.lt.s32.totalorder %s1420_s5, %s1475_s2 }
 0x1d9   : > { %p955_p12 = scmp.lt.s32.totalorder %s953_s18, %s949_s26 }
 0x1da   : > { %p951_p7 = pnand %p950_p6, %p1491_p9 }
 0x1db   : > { %p956_p3 = por %p955_p12, %p954_p11 }
 0x1dc   : > { %p952_p10 = pneg %p951_p7 }
 0x1de   : > { %p957_p8 = pnand %p956_p3, %p952_p10 }
 0x1e0   : > { %960 = shalt.err (!%p957_p8)
}
 0x1e1   : > { %s1079_s3 = smov 128   ;;  %s1080_s4 = smov 8  }
 0x1e2   : > { %796 = dma.vmem_to_hbm [thread:$0]  (%p1491_p9), %s1415_s1, 256, %s1420_s5, %s639_s7, %s1079_s3, %s1079_s3, %s1080_s4  }
 0x1e3 PF: > { %p808_p13 = scmp.ge.s32.totalorder %s1051_s16, 2  ;;  %s669_s8 = sand.u32 1, %s1023_s9  }
 0x1e4   : > { %p1492_p0 = scmp.ne.s32.totalorder %s1481_s25, 0  ;;  %s670_s21 = scalar_lea.sflag [#allocation3], %s669_s8 }
 0x1e6   : > { %p803_p1 = pnand %p808_p13, %p1492_p0 }
 0x1e8   : > { %p804_p2 = pneg %p803_p1 }
 0x1ea   : > { %1018 = dma.done.wait (%p804_p2), %s670_s21, 256  }
 0x1eb   : > { %1020 = vsyncadd (%p804_p2), %s670_s21, 4294967040  ;;  %s16_s16 = sadd.s32 1, %s1051_s16   ;;  %s1493_s9 = smov %s1027_s10 }
 0x1ec   : > { %p13_p4 = scmp.ge.s32.totalorder %s16_s16, 10   ;;  %s1494_s10 = smov %s1031_s11 }
 0x1ed   : > { %s1495_s11 = smov %s1178_s30  ;;  %s1496_s12 = smov %s1043_s14 }
 0x1ee   : > { %s1497_s13 = smov %s1047_s15  ;;  %s1498_s14 = smov %s1501_s19 }
 0x1ef   : > { %s1499_s15 = smov %s1505_s20  ;;  %15 = sbr.rel (!%p13_p4) target bundleno = 9 (0x9), region = 131 }
 0x1f4   :  { %675 = vsyncpa [#allocation3], 1 }
 0x1f5   :  { %677 = vsyncpa [#allocation3 + $0x1], 1 }
 0x1f6   :  { %678 = vsyncpa [#allocation4], 1 }
 0x1f7   :  { %680 = vsyncpa [#allocation4 + $0x1], 1 }

</bundles_post_ra>
